<compile_context>
chip_gen: v6e
topology: v6e:2x2x1
jax: 0.10.0
libtpu: 0.0.40
codegen_flags: <defaults>
</compile_context>

<pallas_src>
import functools

import numpy as np

import jax
import jax.numpy as jnp
from jax import lax
from jax.experimental import pallas as pl
from jax.experimental.pallas import tpu as pltpu

NEG = -1e30  # finite large-negative mask value (-inf would NaN the online max); the
             # online rescale makes rows whose edges appear in a later tile self-correct,
             # provided every target row has at least one edge (self-loops guarantee it).


# --------------------------- GATv2: fused projections -------------------------

def project_kernel(x_ref, xt_ref, wr_ref, br_ref, wlt_ref, blt_ref, xr_ref, xlt_ref):
    """xr = x @ Wr + br  (targets / lin_r),  xl^T = Wl^T @ x^T + bl^T (sources / lin_l)."""
    xr_ref[...] = (jnp.dot(x_ref[...], wr_ref[...], preferred_element_type=jnp.float32)
                   + br_ref[...])
    xlt_ref[...] = (jnp.dot(wlt_ref[...], xt_ref[...], preferred_element_type=jnp.float32)
                    + blt_ref[...])


def gat_project(x, gp, cfg, *, tile_n=256):
    n, fin = x.shape
    hc = cfg["num_heads"] * cfg["gat_out_channels"]
    tile_n = min(tile_n, n)
    assert n % tile_n == 0 and tile_n % 8 == 0
    assert tile_n == n or tile_n % 128 == 0            # lane-dense xl^T writes
    xt = x.T                                           # tiny [fin, N] transpose in XLA
    wlt = gp["Wl"].T                                   # [hc, fin]
    blt = gp["bl"].T                                   # [hc, 1]
    return pl.pallas_call(
        project_kernel,
        out_shape=(jax.ShapeDtypeStruct((n, hc), jnp.float32),     # xr
                   jax.ShapeDtypeStruct((hc, n), jnp.float32)),    # xl^T (source on lanes)
        grid=(n // tile_n,),
        in_specs=[
            pl.BlockSpec((tile_n, fin), lambda i: (i, 0)),   # x
            pl.BlockSpec((fin, tile_n), lambda i: (0, i)),   # x^T
            pl.BlockSpec((fin, hc), lambda i: (0, 0)),       # Wr
            pl.BlockSpec((1, hc), lambda i: (0, 0)),         # br
            pl.BlockSpec((hc, fin), lambda i: (0, 0)),       # Wl^T
            pl.BlockSpec((hc, 1), lambda i: (0, 0)),         # bl^T
        ],
        out_specs=(pl.BlockSpec((tile_n, hc), lambda i: (i, 0)),
                   pl.BlockSpec((hc, tile_n), lambda i: (0, i))),
        compiler_params=pltpu.CompilerParams(dimension_semantics=("parallel",)),
    )(x, xt, gp["Wr"], gp["br"], wlt, blt)


# --------------------- GATv2: tiled attention, online softmax -----------------

def gatv2_attn_kernel(tmap_ref, tcnt_ref,                 # scalar-prefetch (SMEM)
                      xr_ref, xlt_ref, adj_ref, att_ref, bias_ref,
                      out_ref,
                      m_ref, l_ref, acc_ref,
                      *, num_heads, out_channels):
    H, C = num_heads, out_channels
    i = pl.program_id(0)
    j = pl.program_id(1)
    cnt = tcnt_ref[i]                                     # # of non-empty source tiles

    @pl.when(j == 0)
    def _init():
        m_ref[...] = jnp.full_like(m_ref, NEG)
        l_ref[...] = jnp.zeros_like(l_ref)
        acc_ref[...] = jnp.zeros_like(acc_ref)

    @pl.when(j < cnt)                                     # skip padded (duplicate) steps
    def _step():
        xr = xr_ref[...]                                  # [Tt, H*C] f32 (targets, lin_r)
        xlt = xlt_ref[...]                                # [H*C, Ts] f32 (sources, lin_l)
        att = att_ref[...]                                # [H*C, 1]  f32
        edge = adj_ref[...] > 0                           # [Tt, Ts]  int8 mask -> bool
        xlt_bf = xlt.astype(jnp.bfloat16)

        # Per-head score pass keeps the live intermediate at [Tt, C, Ts] (not [Tt, H*C, Ts]).
        for h in range(H):
            xr_h = xr[:, h * C:(h + 1) * C]               # [Tt, C]
            xlt_h = xlt[h * C:(h + 1) * C, :]             # [C, Ts]
            att_h = att[h * C:(h + 1) * C, :]             # [C, 1]

            s = xr_h[:, :, None] + xlt_h[None, :, :]      # [Tt, C, Ts]
            s = jnp.maximum(s, 0.2 * s)                   # LeakyReLU(0.2), single vmax
            e = jnp.sum(s * att_h[None, :, :], axis=1)    # [Tt, Ts]  att contraction
            e = jnp.where(edge, e, NEG)

            m_prev = m_ref[h]                                          # [Tt, 1]
            m_new = jnp.maximum(m_prev, jnp.max(e, axis=1, keepdims=True))
            scale = jnp.exp(m_prev - m_new)
            p = jnp.exp(e - m_new)                                     # ~0 on non-edges
            l_ref[h] = scale * l_ref[h] + jnp.sum(p, axis=1, keepdims=True)
            # alpha @ xl_h : bf16 operands, f32 accumulate; rhs transposed -> NT matmul
            acc_ref[h] = scale * acc_ref[h] + lax.dot_general(
                p.astype(jnp.bfloat16), xlt_bf[h * C:(h + 1) * C, :],
                dimension_numbers=(((1,), (1,)), ((), ())),
                preferred_element_type=jnp.float32)
            m_ref[h] = m_new

    @pl.when(j == cnt - 1)                                # last *valid* source step
    def _fin():
        out = acc_ref[0] * pl.reciprocal(l_ref[0], approx=True)
        for h in range(1, H):
            out = out + acc_ref[h] * pl.reciprocal(l_ref[h], approx=True)
        out_ref[...] = out * (1.0 / H) + bias_ref[...]    # concat=False -> head mean


def _build_tile_map(adj, tile_tgt, tile_src):
    """Per-target-tile list of non-empty source tiles (block-sparse skip table)."""
    n = adj.shape[0]
    ti, tj = n // tile_tgt, n // tile_src
    occ = np.asarray(adj, dtype=np.int32).reshape(ti, tile_tgt, tj, tile_src)
    occ = occ.max(axis=(1, 3)) > 0                         # [ti, tj] occupancy
    cnt = occ.sum(axis=1).astype(np.int32)
    assert int(cnt.min()) >= 1, "every target row needs >=1 edge (add self-loops)"
    jmax = int(cnt.max())
    tmap = np.zeros((ti, jmax), dtype=np.int32)
    for r in range(ti):
        idx = np.nonzero(occ[r])[0].astype(np.int32)
        pad = np.full(jmax - idx.size, idx[-1], dtype=np.int32)   # repeat last -> no re-DMA
        tmap[r] = np.concatenate([idx, pad])
    return jnp.asarray(tmap), jnp.asarray(cnt), jmax


def gatv2_attention(xr, xlt, adj, gp, cfg, *, tile_tgt=128, tile_src=256):
    n = xr.shape[0]
    H, C = cfg["num_heads"], cfg["gat_out_channels"]
    hc = H * C
    tile_tgt = min(tile_tgt, n)
    tile_src = min(tile_src, n)
    assert n % tile_tgt == 0 and n % tile_src == 0
    assert tile_tgt % 8 == 0 and hc % 8 == 0
    assert tile_src == n or tile_src % 128 == 0

    tmap, tcnt, jmax = _build_tile_map(adj, tile_tgt, tile_src)
    att_col = gp["att"].reshape(hc, 1)
    kernel = functools.partial(gatv2_attn_kernel, num_heads=H, out_channels=C)

    return pl.pallas_call(
        kernel,
        out_shape=jax.ShapeDtypeStruct((n, C), jnp.float32),
        grid_spec=pltpu.PrefetchScalarGridSpec(
            num_scalar_prefetch=2,
            grid=(n // tile_tgt, jmax),
            in_specs=[
                pl.BlockSpec((tile_tgt, hc), lambda i, j, tm, tc: (i, 0)),          # xr
                pl.BlockSpec((hc, tile_src), lambda i, j, tm, tc: (0, tm[i, j])),   # xl^T
                pl.BlockSpec((tile_tgt, tile_src), lambda i, j, tm, tc: (i, tm[i, j])),  # adj
                pl.BlockSpec((hc, 1), lambda i, j, tm, tc: (0, 0)),                 # att
                pl.BlockSpec((1, C), lambda i, j, tm, tc: (0, 0)),                  # bias
            ],
            out_specs=pl.BlockSpec((tile_tgt, C), lambda i, j, tm, tc: (i, 0)),
            scratch_shapes=[
                pltpu.VMEM((H, tile_tgt, 1), jnp.float32),   # running max  m
                pltpu.VMEM((H, tile_tgt, 1), jnp.float32),   # running sum  l
                pltpu.VMEM((H, tile_tgt, C), jnp.float32),   # running weighted sum
            ]),
        compiler_params=pltpu.CompilerParams(
            dimension_semantics=("parallel", "arbitrary"),
            vmem_limit_bytes=32 * 1024 * 1024),
    )(tmap, tcnt, xr, xlt, adj, att_col, gp["bias"])


# ------------------ fused head: mean-pool -> GRU stack -> FC ------------------

def head_kernel(pool_ref, emb_ref, *refs, num_layers):
    h_acc = refs[-1]          # [G, C] VMEM scratch
    out_ref = refs[-2]
    w = refs[:-2]
    step = pl.program_id(0)

    @pl.when(step == 0)
    def _init():
        h_acc[...] = jnp.zeros_like(h_acc)

    # global mean pool, accumulated tile-by-tile over nodes
    h_acc[...] += jnp.dot(pool_ref[...], emb_ref[...], preferred_element_type=jnp.float32)

    @pl.when(step == pl.num_programs(0) - 1)
    def _fin():
        h = h_acc[...]
        idx = 0
        for _ in range(num_layers):
            wir, wiz, win, bir, biz, bin_, bhr, bhz, bhn = (w[idx + k][...] for k in range(9))
            idx += 9
            # seq_len == 1 and h0 == 0 (PyTorch default) -> W_hh @ h0 == 0 exactly; only the
            # hidden biases of the recurrent path remain.  Gate order r, z, n (PyTorch).
            r = jax.nn.sigmoid(jnp.dot(h, wir, preferred_element_type=jnp.float32) + bir + bhr)
            z = jax.nn.sigmoid(jnp.dot(h, wiz, preferred_element_type=jnp.float32) + biz + bhz)
            n = jnp.tanh(jnp.dot(h, win, preferred_element_type=jnp.float32) + bin_ + r * bhn)
            h = (1.0 - z) * n                      # + z * h0 (== 0)
        out_ref[...] = (jnp.dot(h, w[idx][...], preferred_element_type=jnp.float32)
                        + w[idx + 1][...])


def pooled_gru_fc(node_emb, pool_mat, gru_params, fc_params, *, tile_n=256):
    g, n = pool_mat.shape
    c = node_emb.shape[1]
    ncls = fc_params["W"].shape[1]
    tile_n = min(tile_n, n)
    assert n % tile_n == 0
    assert tile_n == n or tile_n % 128 == 0

    flat = []
    for lp in gru_params:
        flat += [lp["Wir"], lp["Wiz"], lp["Win"],
                 lp["bir"], lp["biz"], lp["bin"],
                 lp["bhr"], lp["bhz"], lp["bhn"]]
    flat += [fc_params["W"], fc_params["b"]]

    weight_specs = [pl.BlockSpec(wm.shape, lambda i: (0, 0)) for wm in flat]
    kernel = functools.partial(head_kernel, num_layers=len(gru_params))
    return pl.pallas_call(
        kernel,
        out_shape=jax.ShapeDtypeStruct((g, ncls), jnp.float32),
        grid=(n // tile_n,),
        in_specs=[pl.BlockSpec((g, tile_n), lambda i: (0, i)),        # pool tile
                  pl.BlockSpec((tile_n, c), lambda i: (i, 0)),        # node-emb tile
                  *weight_specs],
        out_specs=pl.BlockSpec((g, ncls), lambda i: (0, 0)),
        scratch_shapes=[pltpu.VMEM((g, c), jnp.float32)],
        compiler_params=pltpu.CompilerParams(dimension_semantics=("arbitrary",)),
    )(pool_mat, node_emb, *flat)


# ---------------------------------- forward -----------------------------------

def gatgru_forward(x, adj, pool_mat, params, cfg):
    xr, xlt = gat_project(x, params["gat"], cfg)
    node_emb = gatv2_attention(xr, xlt, adj, params["gat"], cfg)
    return pooled_gru_fc(node_emb, pool_mat, params["gru"], params["fc"])


# ------------------------------ parameter init --------------------------------

def init_params(key, cfg):
    fin = cfg["in_channels"]
    c = cfg["gat_out_channels"]
    h = cfg["num_heads"]
    hid = cfg["gru_hidden_size"]
    ncls = cfg["num_classes"]
    nlayers = cfg["num_gru_layers"]

    keys = iter(jax.random.split(key, 8 + 9 * nlayers))
    s = 0.1
    nk = lambda shape: s * jax.random.normal(next(keys), shape, jnp.float32)

    gat = {"Wl": nk((fin, h * c)), "bl": nk((1, h * c)),
           "Wr": nk((fin, h * c)), "br": nk((1, h * c)),
           "att": nk((h, c)), "bias": nk((1, c))}
    gru = []
    for layer in range(nlayers):
        in_sz = c if layer == 0 else hid
        # per-gate matrices (lane-aligned) in PyTorch gate order r, z, n.
        # W_hh_* omitted: with seq_len == 1 and zero initial hidden state they never
        # influence the forward output (W_hh @ h0 == 0); hidden biases are kept.
        gru.append({
            "Wir": nk((in_sz, hid)), "Wiz": nk((in_sz, hid)), "Win": nk((in_sz, hid)),
            "bir": nk((1, hid)), "biz": nk((1, hid)), "bin": nk((1, hid)),
            "bhr": nk((1, hid)), "bhz": nk((1, hid)), "bhn": nk((1, hid)),
        })
    fc_p = {"W": nk((hid, ncls)), "b": nk((1, ncls))}
    return {"gat": gat, "gru": gru, "fc": fc_p}


# ------------------------------ example / main ---------------------------------

if __name__ == "__main__":
    cfg = dict(in_channels=8, gat_out_channels=16, gru_hidden_size=32,
               num_classes=4, num_heads=2, num_gru_layers=2)

    key = jax.random.PRNGKey(0)
    k_x, k_p = jax.random.split(key)

    nodes_per_graph = 128
    num_graphs = 4
    num_nodes = nodes_per_graph * num_graphs      # 512 -> exercises tiled grid + sparse skip
    x = jax.random.normal(k_x, (num_nodes, cfg["in_channels"]), jnp.float32)

    batch_index = jnp.repeat(jnp.arange(num_graphs, dtype=jnp.int32), nodes_per_graph)

    # deterministic edge_index: ring within each graph (both directions)
    src, dst = [], []
    for g0 in range(0, num_nodes, nodes_per_graph):
        for i in range(nodes_per_graph):
            a = g0 + i
            b = g0 + (i + 1) % nodes_per_graph
            src += [a, b]
            dst += [b, a]
    edge_index = jnp.array([src, dst], dtype=jnp.int32)

    # dense int8 adjacency mask adj[i, j] = 1 for edge j->i, plus self-loops (matches
    # GATv2Conv add_self_loops=True and guarantees every target row has >=1 edge).
    adj = jnp.zeros((num_nodes, num_nodes), jnp.int8)
    adj = adj.at[edge_index[1], edge_index[0]].set(1)
    adj = adj.at[jnp.arange(num_nodes), jnp.arange(num_nodes)].set(1)

    # row-normalized pooling matrix [G, N] (mean pool)
    one_hot = (batch_index[None, :] == jnp.arange(num_graphs)[:, None]).astype(jnp.float32)
    pool_mat = one_hot / jnp.sum(one_hot, axis=1, keepdims=True)

    params = init_params(k_p, cfg)

    logits = gatgru_forward(x, adj, pool_mat, params, cfg)
    jax.block_until_ready(logits)
    assert logits.shape == (num_graphs, cfg["num_classes"])
    print("KERNEL_OK")
</pallas_src>

<mosaic_0001>
module attributes {stable_mosaic.version = 11 : i64} {
  func.func @project_kernel(%arg0: i32, %arg1: memref<256x8xf32, #tpu.memory_space<vmem>>, %arg2: memref<8x256xf32, #tpu.memory_space<vmem>>, %arg3: memref<8x32xf32, #tpu.memory_space<vmem>>, %arg4: memref<1x32xf32, #tpu.memory_space<vmem>>, %arg5: memref<32x8xf32, #tpu.memory_space<vmem>>, %arg6: memref<32x1xf32, #tpu.memory_space<vmem>>, %arg7: memref<256x32xf32, #tpu.memory_space<vmem>>, %arg8: memref<32x256xf32, #tpu.memory_space<vmem>>) attributes {dimension_semantics = [#tpu.dimension_semantics<parallel>], iteration_bounds = array<i64: 2>, scalar_prefetch = 0 : i64, scratch_operands = 0 : i64, tpu.core_type = #tpu.core_type<tc>, window_params = [{transform_indices = @transform_0, window_bounds = array<i64: 256, 8>}, {transform_indices = @transform_1, window_bounds = array<i64: 8, 256>}, {pipeline_mode = #tpu.pipeline_mode<synchronous>, transform_indices = @transform_2, window_bounds = array<i64: 8, 32>}, {pipeline_mode = #tpu.pipeline_mode<synchronous>, transform_indices = @transform_3, window_bounds = array<i64: 1, 32>}, {pipeline_mode = #tpu.pipeline_mode<synchronous>, transform_indices = @transform_4, window_bounds = array<i64: 32, 8>}, {pipeline_mode = #tpu.pipeline_mode<synchronous>, transform_indices = @transform_5, window_bounds = array<i64: 32, 1>}, {transform_indices = @transform_6, window_bounds = array<i64: 256, 32>}, {transform_indices = @transform_7, window_bounds = array<i64: 32, 256>}]} {
    %c0 = arith.constant 0 : index
    %c0_0 = arith.constant 0 : index
    %0 = vector.load %arg1[%c0, %c0_0] : memref<256x8xf32, #tpu.memory_space<vmem>>, vector<256x8xf32>
    %c0_1 = arith.constant 0 : index
    %c0_2 = arith.constant 0 : index
    %1 = vector.load %arg3[%c0_1, %c0_2] : memref<8x32xf32, #tpu.memory_space<vmem>>, vector<8x32xf32>
    %cst = arith.constant dense<0.000000e+00> : vector<256x32xf32>
    %2 = tpu.matmul %0, %1, %cst {dimension_numbers = #tpu.dot_dimension_numbers<[1], [0], [0], [1], [0, 0, 1, 1], [], []>} : vector<256x8xf32>, vector<8x32xf32>, vector<256x32xf32> -> vector<256x32xf32>
    %c0_3 = arith.constant 0 : index
    %c0_4 = arith.constant 0 : index
    %3 = vector.load %arg4[%c0_3, %c0_4] : memref<1x32xf32, #tpu.memory_space<vmem>>, vector<1x32xf32>
    %4 = vector.broadcast %3 : vector<1x32xf32> to vector<256x32xf32>
    %5 = arith.addf %2, %4 : vector<256x32xf32>
    %c0_5 = arith.constant 0 : index
    %c0_6 = arith.constant 0 : index
    %6 = vector.load %arg7[%c0_5, %c0_6] : memref<256x32xf32, #tpu.memory_space<vmem>>, vector<256x32xf32>
    tpu.vector_store %arg7[%c0_5, %c0_6], %5 {strides = array<i32>} : memref<256x32xf32, #tpu.memory_space<vmem>>, vector<256x32xf32>,
    %c0_7 = arith.constant 0 : index
    %c0_8 = arith.constant 0 : index
    %7 = vector.load %arg5[%c0_7, %c0_8] : memref<32x8xf32, #tpu.memory_space<vmem>>, vector<32x8xf32>
    %c0_9 = arith.constant 0 : index
    %c0_10 = arith.constant 0 : index
    %8 = vector.load %arg2[%c0_9, %c0_10] : memref<8x256xf32, #tpu.memory_space<vmem>>, vector<8x256xf32>
    %cst_11 = arith.constant dense<0.000000e+00> : vector<32x256xf32>
    %9 = tpu.matmul %7, %8, %cst_11 {dimension_numbers = #tpu.dot_dimension_numbers<[1], [0], [0], [1], [0, 0, 1, 1], [], []>} : vector<32x8xf32>, vector<8x256xf32>, vector<32x256xf32> -> vector<32x256xf32>
    %c0_12 = arith.constant 0 : index
    %c0_13 = arith.constant 0 : index
    %10 = vector.load %arg6[%c0_12, %c0_13] : memref<32x1xf32, #tpu.memory_space<vmem>>, vector<32x1xf32>
    %11 = vector.broadcast %10 : vector<32x1xf32> to vector<32x256xf32>
    %12 = arith.addf %9, %11 : vector<32x256xf32>
    %c0_14 = arith.constant 0 : index
    %c0_15 = arith.constant 0 : index
    %13 = vector.load %arg8[%c0_14, %c0_15] : memref<32x256xf32, #tpu.memory_space<vmem>>, vector<32x256xf32>
    tpu.vector_store %arg8[%c0_14, %c0_15], %12 {strides = array<i32>} : memref<32x256xf32, #tpu.memory_space<vmem>>, vector<32x256xf32>,
    return
  }
  func.func @transform_0(%arg0: i32) -> (i32, i32) {
    %c0_i32 = arith.constant 0 : i32
    %c0_i32_0 = arith.constant 0 : i32
    return %arg0, %c0_i32 : i32, i32
  }
  func.func @transform_1(%arg0: i32) -> (i32, i32) {
    %c0_i32 = arith.constant 0 : i32
    %c0_i32_0 = arith.constant 0 : i32
    return %c0_i32, %arg0 : i32, i32
  }
  func.func @transform_2(%arg0: i32) -> (i32, i32) {
    %c0_i32 = arith.constant 0 : i32
    %c0_i32_0 = arith.constant 0 : i32
    %c0_i32_1 = arith.constant 0 : i32
    return %c0_i32, %c0_i32_0 : i32, i32
  }
  func.func @transform_3(%arg0: i32) -> (i32, i32) {
    %c0_i32 = arith.constant 0 : i32
    %c0_i32_0 = arith.constant 0 : i32
    %c0_i32_1 = arith.constant 0 : i32
    return %c0_i32, %c0_i32_0 : i32, i32
  }
  func.func @transform_4(%arg0: i32) -> (i32, i32) {
    %c0_i32 = arith.constant 0 : i32
    %c0_i32_0 = arith.constant 0 : i32
    %c0_i32_1 = arith.constant 0 : i32
    return %c0_i32, %c0_i32_0 : i32, i32
  }
  func.func @transform_5(%arg0: i32) -> (i32, i32) {
    %c0_i32 = arith.constant 0 : i32
    %c0_i32_0 = arith.constant 0 : i32
    %c0_i32_1 = arith.constant 0 : i32
    return %c0_i32, %c0_i32_0 : i32, i32
  }
  func.func @transform_6(%arg0: i32) -> (i32, i32) {
    %c0_i32 = arith.constant 0 : i32
    %c0_i32_0 = arith.constant 0 : i32
    return %arg0, %c0_i32 : i32, i32
  }
  func.func @transform_7(%arg0: i32) -> (i32, i32) {
    %c0_i32 = arith.constant 0 : i32
    %c0_i32_0 = arith.constant 0 : i32
    return %c0_i32, %arg0 : i32, i32
  }
}

</mosaic_0001>

<bundles_post_ra>
// kernel: tpu_custom_call.1
= control target key start
LH: loop header
LB: loop body
LE: loop exit
PB: predicated region body
PF: predicated region fallthrough
CT: control target
= control target key end

     0   :  { %13 = vsyncpa [#allocation3], 0  ;;  %s1595_s0 = inlined_call_operand.vmem [shape: f32[512,8], index: 0, kind: input, shape index: {}]   ;;  %s1596_s1 = inlined_call_operand.vmem [shape: f32[8,512], index: 1, kind: input, shape index: {}]   ;;  %s1597_s2 = inlined_call_operand.vmem [shape: f32[8,32], index: 2, kind: input, shape index: {}]   ;;  %s1598_s3 = inlined_call_operand.vmem [shape: f32[1,32], index: 3, kind: input, shape index: {}]   ;;  %s1599_s4 = inlined_call_operand.vmem [shape: f32[32,8], index: 4, kind: input, shape index: {}]   ;;  %s1600_s5 = inlined_call_operand.vmem [shape: f32[32,1], index: 5, kind: input, shape index: {}]   ;;  %s1601_s6 = inlined_call_operand.vmem [shape: f32[512,32], index: 6, kind: output, shape index: {0}]   ;;  %s1602_s7 = inlined_call_operand.hbm [shape: f32[32,512], index: 7, kind: output, shape index: {1}]  }
   0x1   :  { %15 = vsyncpa [#allocation3 + $0x1], 0  ;;  %s1265_s24 = smov 0   ;;  %s1267_s25 = smov 0  }
   0x2   :  { %s1269_s26 = smov 0   ;;  %s1271_s27 = smov 0  }
   0x3 LB: > { %s1286_s28 = sadd.s32 4294967295, %s1217_s27   ;;  %s972_s29 = sadd.s32 4294967294, %s1217_s27   ;;  %s1217_s27 = sphi %s1271_s27, %s1608_s27   ;;  %s1213_s26 = sphi %s1269_s26, %s1607_s26   ;;  %s1209_s25 = sphi %s1267_s25, %s1606_s25   ;;  %s1205_s24 = sphi %s1265_s24, %s1605_s24  }
   0x4   : > { %s1290_s30 = sadd.s32 1, %s1217_s27   ;;  %s190_s8 = sadd.s32 1, %s1213_s26 }
   0x5   : > { %s187_s9 = ssub.s32 %s1217_s27, %s1290_s30  ;;  %p200_p0 = scmp.ne.s32.totalorder %s1213_s26, %s1209_s25 }
   0x6   : > { %p188_p1 = scmp.eq.s32.totalorder %s187_s9, 0  ;;  %p201_p2 = scmp.eq.s32.totalorder %s1286_s28, 1 }
   0x7   : > { %p206_p3 = scmp.ne.s32.totalorder %s1209_s25, %s1205_s24  ;;  %p207_p4 = scmp.eq.s32.totalorder %s972_s29, 1 }
   0x8   : > { %s1301_s10 = scalar_select %p188_p1, %s1213_s26, %s190_s8  }
   0x9   : > { %p1303_p5 = por %p201_p2, %p200_p0  ;;  %p1307_p6 = por %p207_p4, %p206_p3 }
   0xa   : > { %p975_p7 = scmp.ge.s32.totalorder %s1217_s27, 1  ;;  %p255_p8 = scmp.lt.s32.totalorder %s1217_s27, 3 }
   0xc   : > { %p256_p9 = pnand %p975_p7, %p255_p8 }
   0xd   : > { %s977_s15 = sshll.u32 (!%p256_p9), %s1286_s28, 5  ;;  %s979_s16 = sshll.u32 (!%p256_p9), %s1286_s28, 1 }
   0xe   : > { %259 = sbr.rel (%p256_p9) target bundleno = 273 (0x111), region = 44  ;;  %p298_p10 = scmp.lt.s32.totalorder (!%p256_p9), %s977_s15, 63 }
   0xf   : > { %p304_p11 = scmp.lt.s32.totalorder (!%p256_p9), %s979_s16, 3 }
  0x13   : > { %v348_v0 = vld [vmem:[%s1597_s2] sm:$0xff]  ;;  %v719_v2 = vld [vmem:[%s1600_s5 + $0x10] sm:$0xff]  ;;  %s1610_s15 = smov (!%p298_p10, %s977_s15), 63  ;;  %v1219_v3 = vmov 0   ;;  %s1612_s16 = smov (!%p304_p11, %s979_s16), 3  ;;  %vm356_vm0 = vcmask 64512  }
  0x14   : > { %1109 = vmatprep.subr.mxu1 %v348_v0  ;;  %1059 = vmatprep.subr.mxu0 %v348_v0  ;;  %v717_v1 = vld [vmem:[%s1600_s5] sm:$0xff]  ;;  %s978_s21 = sshll.u32 %s1610_s15, 3  ;;  %s980_s8 = sshll.u32 %s1612_s16, 3  ;;  %v718_v7 = vld [vmem:[%s1600_s5 + $0x8] sm:$0xff]  ;;  %v720_v13 = vld [vmem:[%s1600_s5 + $0x18] sm:$0xff]  ;;  %v1220_v33 = vmov 0.0  }
  0x15   : > { %1110 = vmatpush3.msra.mxu1 %v348_v0  ;;  %1060 = vmatpush3.msra.mxu0 %v348_v0  ;;  %s1332_s29 = scalar_lea.vmem %s1595_s0, %s978_s21  ;;  %s307_s18 = scalar_lea.vmem %s1596_s1, %s980_s8  ;;  %v711_v35 = vld [vmem:[%s1599_s4] sm:$0xff]  ;;  %v712_v38 = vld [vmem:[%s1599_s4 + $0x8] sm:$0xff]  ;;  %v713_v41 = vld [vmem:[%s1599_s4 + $0x10] sm:$0xff]  ;;  %vm678_vm1 = vcmask 261120  }
  0x16   : > { %1155 = vset.pattern.permute.xlu0 %v1219_v3  ;;  %1156 = vset.pattern.permute.xlu1 %v1219_v3  ;;  %v316_v4 = vld [vmem:[%s1332_s29] sm:$0xff]  ;;  %v317_v6 = vld [vmem:[%s1332_s29 + $0x8] sm:$0xff]  ;;  %v318_v9 = vld [vmem:[%s1332_s29 + $0x10] sm:$0xff]  ;;  %s1433_s22 = scalar_lea.vmem %s1601_s6, %s978_s21  ;;  %s294_s15 = sand.u32 1, %s1209_s25  }
  0x17   : > { %723 = vperm.xlu0 %1155, %v717_v1   ;;  %733 = vperm.xlu1 %1156, %v719_v2   ;;  %v336_v5 = vld [vmem:[%s1332_s29 + $0xa0] sm:$0xff]  ;;  %v337_v8 = vld [vmem:[%s1332_s29 + $0xa8] sm:$0xff]  ;;  %v338_v10 = vld [vmem:[%s1332_s29 + $0xb0] sm:$0xff]  ;;  %s976_s21 = sshll.u32 %s294_s15, 6  ;;  %s1025_s8 = sshll.u32 %s1286_s28, 8 }
  0x18   : > { %1061 = vmatprep.mubr.msk.f32.mxu0 %vm356_vm0, %v316_v4  ;;  %1091 = vmatprep.mubr.msk.f32.mxu1 %vm356_vm0, %v336_v5  ;;  %v716_v11 = vld [vmem:[%s307_s18 + $0x8] sm:$0xff]  ;;  %v715_v12 = vld [vmem:[%s307_s18] sm:$0xff]  ;;  %v319_v14 = vld [vmem:[%s1332_s29 + $0x18] sm:$0xff]  ;;  %s1544_s28 = scalar_lea.hbm %s1602_s7, %s1025_s8  ;;  %s1555_s14 = scalar_lea.sflag [#allocation3], %s294_s15 }
  0x19   : > { %1062 = vmatmul.mubr.msk.f32.vlgmr.msra.gmra.mxu0 %vm356_vm0, %v317_v6  ;;  %1092 = vmatmul.mubr.msk.f32.vlgmr.msra.gmra.mxu1 %vm356_vm0, %v337_v8  ;;  %v339_v15 = vld [vmem:[%s1332_s29 + $0xb8] sm:$0xff]  ;;  %v320_v16 = vld [vmem:[%s1332_s29 + $0x20] sm:$0xff]  ;;  %v321_v18 = vld [vmem:[%s1332_s29 + $0x28] sm:$0xff]  ;;  %s1221_s18 = smov [#allocation2]  }
  0x1a   : > { %783 = vmatprep.subr.mxu1 %v716_v11  ;;  %1064 = vmatprep.mubr.msk.f32.mxu0 %vm356_vm0, %v318_v9  ;;  %v340_v17 = vld [vmem:[%s1332_s29 + $0xc0] sm:$0xff]  ;;  %v341_v19 = vld [vmem:[%s1332_s29 + $0xc8] sm:$0xff]  ;;  %v322_v20 = vld [vmem:[%s1332_s29 + $0x30] sm:$0xff]  ;;  %s1161_s16 = sshll.u32 %s1221_s18, 4  ;;  %s1162_s16 = int_to_ptr.vmem [resolvable:$false] %s1161_s16 }
  0x1b   : > { %784 = vmatpush1.msra.mxu1 %v715_v12  ;;  %1094 = vmatprep.mubr.msk.f32.mxu1 %vm356_vm0, %v338_v10  ;;  %v342_v21 = vld [vmem:[%s1332_s29 + $0xd0] sm:$0xff]  ;;  %v323_v22 = vld [vmem:[%s1332_s29 + $0x38] sm:$0xff]  ;;  %v324_v24 = vld [vmem:[%s1332_s29 + $0x40] sm:$0xff]  ;;  %s1163_s19 = scalar_lea.vmem %s1162_s16, 2048 }
  0x1c   : > { %728 = vperm.xlu0 %1155, %v718_v7   ;;  %738 = vperm.xlu1 %1156, %v720_v13   ;;  %v343_v23 = vld [vmem:[%s1332_s29 + $0xd8] sm:$0xff]  ;;  %v344_v25 = vld [vmem:[%s1332_s29 + $0xe0] sm:$0xff]  ;;  %v325_v26 = vld [vmem:[%s1332_s29 + $0x48] sm:$0xff] }
  0x1d   : > { %1065 = vmatmul.mubr.msk.f32.gmra.mxu0 %vm356_vm0, %v319_v14  ;;  %1095 = vmatmul.mubr.msk.f32.gmra.mxu1 %vm356_vm0, %v339_v15  ;;  %v345_v27 = vld [vmem:[%s1332_s29 + $0xe8] sm:$0xff]  ;;  %v326_v28 = vld [vmem:[%s1332_s29 + $0x50] sm:$0xff]  ;;  %v327_v30 = vld [vmem:[%s1332_s29 + $0x58] sm:$0xff] }
  0x1e   : > { %1067 = vmatprep.mubr.msk.f32.mxu0 %vm356_vm0, %v320_v16  ;;  %1097 = vmatprep.mubr.msk.f32.mxu1 %vm356_vm0, %v340_v17  ;;  %v346_v29 = vld [vmem:[%s1332_s29 + $0xf0] sm:$0xff]  ;;  %v347_v31 = vld [vmem:[%s1332_s29 + $0xf8] sm:$0xff]  ;;  %v328_v32 = vld [vmem:[%s1332_s29 + $0x60] sm:$0xff] }
  0x1f   : > { %v329_v34 = vld [vmem:[%s1332_s29 + $0x68] sm:$0xff]  ;;  %v330_v36 = vld [vmem:[%s1332_s29 + $0x70] sm:$0xff]  ;;  %v331_v37 = vld [vmem:[%s1332_s29 + $0x78] sm:$0xff] }
  0x20   : > { %v332_v39 = vld [vmem:[%s1332_s29 + $0x80] sm:$0xff]  ;;  %v333_v40 = vld [vmem:[%s1332_s29 + $0x88] sm:$0xff]  ;;  %v334_v42 = vld [vmem:[%s1332_s29 + $0x90] sm:$0xff] }
  0x21   : > { %1068 = vmatmul.mubr.msk.f32.gmra.mxu0 %vm356_vm0, %v321_v18  ;;  %1098 = vmatmul.mubr.msk.f32.gmra.mxu1 %vm356_vm0, %v341_v19  ;;  %v335_v43 = vld [vmem:[%s1332_s29 + $0x98] sm:$0xff]  ;;  %v1426_v45 = vld [vmem:[%s1598_s3] ss:$0 sm:$0xff]  ;;  %s1513_s29 = scalar_lea.vmem [#allocation2], %s976_s21 }
  0x22   : > { %1070 = vmatprep.mubr.msk.f32.mxu0 %vm356_vm0, %v322_v20  ;;  %1100 = vmatprep.mubr.msk.f32.mxu1 %vm356_vm0, %v342_v21  ;;  %v714_v44 = vld [vmem:[%s1599_s4 + $0x18] sm:$0xff]  ;;  %s873_s23 = sshll.u32 %s1513_s29, 4  ;;  %s1535_s23 = int_to_ptr.vmem [resolvable:$true] %s873_s23 }
  0x23   : > { %s1157_s17 = scalar_lea.vmem %s1535_s23, 1024  ;;  %p1164_p1 = scmp.lt.s32.totalorder %s1535_s23, %s1162_s16 }
  0x24   : > { %p1158_p12 = scmp.ne.s32.totalorder %s1535_s23, %s1157_s17  ;;  %p1165_p2 = scmp.lt.s32.totalorder %s1163_s19, %s1157_s17 }
  0x25   : > { %1071 = vmatmul.mubr.msk.f32.gmra.mxu0 %vm356_vm0, %v323_v22  ;;  %1101 = vmatmul.mubr.msk.f32.gmra.mxu1 %vm356_vm0, %v343_v23 }
  0x26   : > { %1073 = vmatprep.mubr.msk.f32.mxu0 %vm356_vm0, %v324_v24  ;;  %1103 = vmatprep.mubr.msk.f32.mxu1 %vm356_vm0, %v344_v25  ;;  %p1159_p13 = pnand %p1158_p12, %p1303_p5  ;;  %p1166_p3 = por %p1165_p2, %p1164_p1 }
  0x28   : > { %p1160_p0 = pneg %p1159_p13 }
  0x29   : > { %1074 = vmatmul.mubr.msk.f32.gmra.mxu0 %vm356_vm0, %v325_v26  ;;  %1104 = vmatmul.mubr.msk.f32.gmra.mxu1 %vm356_vm0, %v345_v27 }
  0x2a   : > { %1076 = vmatprep.mubr.msk.f32.mxu0 %vm356_vm0, %v326_v28  ;;  %1106 = vmatprep.mubr.msk.f32.mxu1 %vm356_vm0, %v346_v29  ;;  %p1167_p4 = pnand %p1166_p3, %p1160_p0 }
  0x2d   : > { %1077 = vmatmul.mubr.msk.f32.gmra.mxu0 %vm356_vm0, %v327_v30  ;;  %1107 = vmatmul.mubr.msk.f32.gmra.mxu1 %vm356_vm0, %v347_v31 }
  0x2e   : > { %1079 = vmatprep.mubr.msk.f32.mxu0 %vm356_vm0, %v328_v32  ;;  %817 = vmatprep.mubr.f32.mxu1 %v1220_v33 }
  0x31   : > { %1080 = vmatmul.mubr.msk.f32.gmra.mxu0 %vm356_vm0, %v329_v34  ;;  %1016 = vmatmul.mubr.msk.f32.vlgmr.msra.gmra.mxu1 %vm356_vm0, %v711_v35 }
  0x32   : > { %1082 = vmatprep.mubr.msk.f32.mxu0 %vm356_vm0, %v330_v36  ;;  %823 = vmatprep.mubr.f32.mxu1 %v1220_v33 }
  0x35   : > { %1083 = vmatmul.mubr.msk.f32.gmra.mxu0 %vm356_vm0, %v331_v37  ;;  %1017 = vmatmul.mubr.msk.f32.gmra.mxu1 %vm356_vm0, %v712_v38 }
  0x36   : > { %1085 = vmatprep.mubr.msk.f32.mxu0 %vm356_vm0, %v332_v39  ;;  %829 = vmatprep.mubr.f32.mxu1 %v1220_v33 }
  0x39   : > { %1086 = vmatmul.mubr.msk.f32.gmra.mxu0 %vm356_vm0, %v333_v40  ;;  %1018 = vmatmul.mubr.msk.f32.gmra.mxu1 %vm356_vm0, %v713_v41 }
  0x3a   : > { %1088 = vmatprep.mubr.msk.f32.mxu0 %vm356_vm0, %v334_v42  ;;  %835 = vmatprep.mubr.f32.mxu1 %v1220_v33 }
  0x3d   : > { %1089 = vmatmul.mubr.msk.f32.gmra.mxu0 %vm356_vm0, %v335_v43  ;;  %1019 = vmatmul.mubr.msk.f32.gmra.mxu1 %vm356_vm0, %v714_v44 }
  0x92   : > { %v724_v22 = vpop.permute.xlu0 %723  ;;  %v734_v44 = vpop.permute.xlu1 %733 }
  0x97   : > { %v729_v35 = vpop.permute.xlu0 %728 }
  0xd9   : > { %v1063_v46 = vpop.f32.mrf.mxu0  ;;  %v1093_v47 = vpop.f32.mrf.mxu1 }
  0xda   : > { %v525_v48 = vadd.f32 %v1063_v46, %v1426_v45  ;;  %v625_v49 = vadd.f32 %v1093_v47, %v1426_v45 }
  0xdb   : > { %v519_v50 = vpop.f32.mrf.mxu0  ;;  %v619_v51 = vpop.f32.mrf.mxu1 }
  0xdc   : > { %680 = vst.msk [vmem:[%s1433_s22 + $0x8] sm:$0xff] %vm678_vm1, %v525_v48  ;;  %700 = vst.msk [vmem:[%s1433_s22 + $0xa8] sm:$0xff] %vm678_vm1, %v625_v49  ;;  %v520_v52 = vadd.f32 %v1426_v45, %v519_v50  ;;  %v620_v53 = vadd.f32 %v1426_v45, %v619_v51 }
  0xdd   : > { %v1066_v54 = vpop.f32.mrf.mxu0  ;;  %v1096_v55 = vpop.f32.mrf.mxu1 }
  0xde   : > { %679 = vst.msk [vmem:[%s1433_s22] sm:$0xff] %vm678_vm1, %v520_v52  ;;  %699 = vst.msk [vmem:[%s1433_s22 + $0xa0] sm:$0xff] %vm678_vm1, %v620_v53  ;;  %v535_v56 = vadd.f32 %v1066_v54, %v1426_v45  ;;  %v635_v57 = vadd.f32 %v1096_v55, %v1426_v45 }
  0xdf   : > { %v529_v58 = vpop.f32.mrf.mxu0  ;;  %v629_v59 = vpop.f32.mrf.mxu1 }
  0xe0   : > { %682 = vst.msk [vmem:[%s1433_s22 + $0x18] sm:$0xff] %vm678_vm1, %v535_v56  ;;  %702 = vst.msk [vmem:[%s1433_s22 + $0xb8] sm:$0xff] %vm678_vm1, %v635_v57  ;;  %v530_v60 = vadd.f32 %v1426_v45, %v529_v58  ;;  %v630_v61 = vadd.f32 %v1426_v45, %v629_v59  ;;  %v739_v56 = vpop.permute.xlu1 %738 }
  0xe1   : > { %v1069_v62 = vpop.f32.mrf.mxu0  ;;  %v1099_v63 = vpop.f32.mrf.mxu1 }
  0xe2   : > { %681 = vst.msk [vmem:[%s1433_s22 + $0x10] sm:$0xff] %vm678_vm1, %v530_v60  ;;  %701 = vst.msk [vmem:[%s1433_s22 + $0xb0] sm:$0xff] %vm678_vm1, %v630_v61  ;;  %v545_v0 = vadd.f32 %v1069_v62, %v1426_v45  ;;  %v645_v1 = vadd.f32 %v1099_v63, %v1426_v45 }
  0xe3   : > { %v539_v2 = vpop.f32.mrf.mxu0  ;;  %v639_v3 = vpop.f32.mrf.mxu1 }
  0xe4   : > { %684 = vst.msk [vmem:[%s1433_s22 + $0x28] sm:$0xff] %vm678_vm1, %v545_v0  ;;  %704 = vst.msk [vmem:[%s1433_s22 + $0xc8] sm:$0xff] %vm678_vm1, %v645_v1  ;;  %v540_v4 = vadd.f32 %v1426_v45, %v539_v2  ;;  %v640_v5 = vadd.f32 %v1426_v45, %v639_v3 }
  0xe5   : > { %v1072_v6 = vpop.f32.mrf.mxu0  ;;  %v1102_v7 = vpop.f32.mrf.mxu1 }
  0xe6   : > { %683 = vst.msk [vmem:[%s1433_s22 + $0x20] sm:$0xff] %vm678_vm1, %v540_v4  ;;  %703 = vst.msk [vmem:[%s1433_s22 + $0xc0] sm:$0xff] %vm678_vm1, %v640_v5  ;;  %v555_v8 = vadd.f32 %v1072_v6, %v1426_v45  ;;  %v655_v9 = vadd.f32 %v1102_v7, %v1426_v45 }
  0xe7   : > { %v549_v10 = vpop.f32.mrf.mxu0  ;;  %v649_v11 = vpop.f32.mrf.mxu1 }
  0xe8   : > { %686 = vst.msk [vmem:[%s1433_s22 + $0x38] sm:$0xff] %vm678_vm1, %v555_v8  ;;  %706 = vst.msk [vmem:[%s1433_s22 + $0xd8] sm:$0xff] %vm678_vm1, %v655_v9  ;;  %v550_v12 = vadd.f32 %v1426_v45, %v549_v10  ;;  %v650_v13 = vadd.f32 %v1426_v45, %v649_v11 }
  0xe9   : > { %v1075_v14 = vpop.f32.mrf.mxu0  ;;  %v1105_v15 = vpop.f32.mrf.mxu1 }
  0xea   : > { %685 = vst.msk [vmem:[%s1433_s22 + $0x30] sm:$0xff] %vm678_vm1, %v550_v12  ;;  %705 = vst.msk [vmem:[%s1433_s22 + $0xd0] sm:$0xff] %vm678_vm1, %v650_v13  ;;  %v565_v16 = vadd.f32 %v1075_v14, %v1426_v45  ;;  %v665_v17 = vadd.f32 %v1105_v15, %v1426_v45 }
  0xeb   : > { %v559_v18 = vpop.f32.mrf.mxu0  ;;  %v659_v19 = vpop.f32.mrf.mxu1 }
  0xec   : > { %688 = vst.msk [vmem:[%s1433_s22 + $0x48] sm:$0xff] %vm678_vm1, %v565_v16  ;;  %708 = vst.msk [vmem:[%s1433_s22 + $0xe8] sm:$0xff] %vm678_vm1, %v665_v17  ;;  %v560_v20 = vadd.f32 %v1426_v45, %v559_v18  ;;  %v660_v21 = vadd.f32 %v1426_v45, %v659_v19 }
  0xed   : > { %v1078_v23 = vpop.f32.mrf.mxu0  ;;  %v1108_v24 = vpop.f32.mrf.mxu1 }
  0xee   : > { %687 = vst.msk [vmem:[%s1433_s22 + $0x40] sm:$0xff] %vm678_vm1, %v560_v20  ;;  %707 = vst.msk [vmem:[%s1433_s22 + $0xe0] sm:$0xff] %vm678_vm1, %v660_v21  ;;  %v575_v25 = vadd.f32 %v1078_v23, %v1426_v45  ;;  %v675_v26 = vadd.f32 %v1108_v24, %v1426_v45 }
  0xef   : > { %v569_v27 = vpop.f32.mrf.mxu0  ;;  %v669_v28 = vpop.f32.mrf.mxu1 }
  0xf0   : > { %690 = vst.msk [vmem:[%s1433_s22 + $0x58] sm:$0xff] %vm678_vm1, %v575_v25  ;;  %710 = vst.msk [vmem:[%s1433_s22 + $0xf8] sm:$0xff] %vm678_vm1, %v675_v26  ;;  %v570_v29 = vadd.f32 %v1426_v45, %v569_v27  ;;  %v670_v30 = vadd.f32 %v1426_v45, %v669_v28 }
  0xf1   : > { %v1081_v31 = vpop.f32.mrf.mxu0  ;;  %v819_v32 = vpop.f32.mrf.mxu1 }
  0xf2   : > { %689 = vst.msk [vmem:[%s1433_s22 + $0x50] sm:$0xff] %vm678_vm1, %v570_v29  ;;  %709 = vst.msk [vmem:[%s1433_s22 + $0xf0] sm:$0xff] %vm678_vm1, %v670_v30  ;;  %v585_v33 = vadd.f32 %v1081_v31, %v1426_v45  ;;  %v820_v34 = vadd.f32 %v819_v32, %v724_v22 }
  0xf3   : > { %v579_v36 = vpop.f32.mrf.mxu0  ;;  %v821_v37 = vpop.f32.mrf.mxu1 }
  0xf4   : > { %692 = vst.msk [vmem:[%s1433_s22 + $0x68] sm:$0xff] %vm678_vm1, %v585_v33  ;;  %842 = vst [vmem:[%s1513_s29] sm:$0xff] %v820_v34  ;;  %v580_v38 = vadd.f32 %v1426_v45, %v579_v36  ;;  %v822_v39 = vadd.f32 %v821_v37, %v724_v22 }
  0xf5   : > { %v1084_v40 = vpop.f32.mrf.mxu0  ;;  %v825_v41 = vpop.f32.mrf.mxu1 }
  0xf6   : > { %691 = vst.msk [vmem:[%s1433_s22 + $0x60] sm:$0xff] %vm678_vm1, %v580_v38  ;;  %843 = vst [vmem:[%s1513_s29 + $0x8] sm:$0xff] %v822_v39  ;;  %v595_v42 = vadd.f32 %v1084_v40, %v1426_v45  ;;  %v826_v43 = vadd.f32 %v825_v41, %v729_v35 }
  0xf7   : > { %v589_v46 = vpop.f32.mrf.mxu0  ;;  %v827_v47 = vpop.f32.mrf.mxu1 }
  0xf8   : > { %694 = vst.msk [vmem:[%s1433_s22 + $0x78] sm:$0xff] %vm678_vm1, %v595_v42  ;;  %844 = vst [vmem:[%s1513_s29 + $0x10] sm:$0xff] %v826_v43  ;;  %v590_v48 = vadd.f32 %v1426_v45, %v589_v46  ;;  %v828_v49 = vadd.f32 %v827_v47, %v729_v35 }
  0xf9   : > { %v1087_v50 = vpop.f32.mrf.mxu0  ;;  %v831_v51 = vpop.f32.mrf.mxu1 }
  0xfa   : > { %693 = vst.msk [vmem:[%s1433_s22 + $0x70] sm:$0xff] %vm678_vm1, %v590_v48  ;;  %845 = vst [vmem:[%s1513_s29 + $0x18] sm:$0xff] %v828_v49  ;;  %v605_v52 = vadd.f32 %v1087_v50, %v1426_v45  ;;  %v832_v53 = vadd.f32 %v831_v51, %v734_v44 }
  0xfb   : > { %v599_v54 = vpop.f32.mrf.mxu0  ;;  %v833_v55 = vpop.f32.mrf.mxu1 }
  0xfc   : > { %696 = vst.msk [vmem:[%s1433_s22 + $0x88] sm:$0xff] %vm678_vm1, %v605_v52  ;;  %846 = vst [vmem:[%s1513_s29 + $0x20] sm:$0xff] %v832_v53  ;;  %v600_v57 = vadd.f32 %v1426_v45, %v599_v54  ;;  %v834_v58 = vadd.f32 %v833_v55, %v734_v44 }
  0xfd   : > { %v1090_v59 = vpop.f32.mrf.mxu0  ;;  %v837_v60 = vpop.f32.mrf.mxu1 }
  0xfe   : > { %695 = vst.msk [vmem:[%s1433_s22 + $0x80] sm:$0xff] %vm678_vm1, %v600_v57  ;;  %847 = vst [vmem:[%s1513_s29 + $0x28] sm:$0xff] %v834_v58  ;;  %v615_v61 = vadd.f32 %v1090_v59, %v1426_v45  ;;  %v838_v62 = vadd.f32 %v837_v60, %v739_v56 }
  0xff   : > { %v609_v63 = vpop.f32.mrf.mxu0  ;;  %v839_v0 = vpop.f32.mrf.mxu1 }
 0x100   : > { %698 = vst.msk [vmem:[%s1433_s22 + $0x98] sm:$0xff] %vm678_vm1, %v615_v61  ;;  %848 = vst [vmem:[%s1513_s29 + $0x30] sm:$0xff] %v838_v62  ;;  %v610_v1 = vadd.f32 %v1426_v45, %v609_v63  ;;  %v840_v2 = vadd.f32 %v839_v0, %v739_v56 }
 0x102   : > { %697 = vst.msk [vmem:[%s1433_s22 + $0x90] sm:$0xff] %vm678_vm1, %v610_v1  ;;  %849 = vst [vmem:[%s1513_s29 + $0x38] sm:$0xff] %v840_v2 }
 0x103   : > { %1170 = shalt.err (!%p1167_p4)
}
 0x104   : > { %s1171_s20 = scalar_lea.hbm %s1544_s28, 1024  ;;  %s1175_s21 = scalar_lea.hbm %s1602_s7, 2048 }
 0x105   : > { %p1172_p7 = scmp.ne.s32.totalorder %s1544_s28, %s1171_s20  ;;  %p1176_p10 = scmp.lt.s32.totalorder %s1544_s28, %s1602_s7 }
 0x106   : > { %p1177_p11 = scmp.lt.s32.totalorder %s1175_s21, %s1171_s20 }
 0x107   : > { %p1173_p8 = pnand %p1172_p7, %p1303_p5 }
 0x108   : > { %p1178_p12 = por %p1177_p11, %p1176_p10 }
 0x109   : > { %p1174_p9 = pneg %p1173_p8 }
 0x10b   : > { %p1179_p13 = pnand %p1178_p12, %p1174_p9 }
 0x10d   : > { %1182 = shalt.err (!%p1179_p13)
}
 0x10e   : > { %s1222_s9 = smov 256   ;;  %s1223_s13 = smov 512  }
 0x10f   : > { %s1224_s17 = smov 16  }
 0x110   : > { %1111 = dma.vmem_to_hbm [thread:$0]  (%p1303_p5), %s1535_s23, 1024, %s1544_s28, %s1555_s14, %s1222_s9, %s1223_s13, %s1224_s17  }
 0x111 PF: > { %p1117_p0 = scmp.ge.s32.totalorder %s1217_s27, 2  ;;  %s896_s18 = sand.u32 1, %s1205_s24  }
 0x112   : > { %s897_s16 = scalar_lea.sflag [#allocation3], %s896_s18 }
 0x113   : > { %p1114_p1 = pnand %p1117_p0, %p1307_p6 }
 0x115   : > { %p1115_p2 = pneg %p1114_p1 }
 0x117   : > { %1200 = dma.done.wait (%p1115_p2), %s897_s16, 1024  }
 0x118   : > { %1202 = vsyncadd (%p1115_p2), %s897_s16, 4294966272  ;;  %p18_p3 = scmp.ge.s32.totalorder %s1290_s30, 4   ;;  %s1605_s24 = smov %s1209_s25 }
 0x119   : > { %s1606_s25 = smov %s1213_s26  ;;  %s1607_s26 = smov %s1301_s10 }
 0x11a   : > { %s1608_s27 = smov %s1290_s30  ;;  %20 = sbr.rel (!%p18_p3) target bundleno = 3 (0x3), region = 94 }
 0x11f   :  { %902 = vsyncpa [#allocation3], 1 }
 0x120   :  { %904 = vsyncpa [#allocation3 + $0x1], 1 }

</bundles_post_ra>
